<compile_context>
chip_gen: v5e
topology: v5e:2x2
jax: 0.10.0
libtpu: 0.0.40
codegen_flags: <defaults>
</compile_context>

<pallas_src>
import functools

import jax
import jax.numpy as jnp
from jax import lax
from jax.experimental import pallas as pl
from jax.experimental.pallas import tpu as pltpu


_TARGET_BLOCK_BYTES = 4 * 1024 * 1024   # ~4 MiB x-tiles (perf review)
_VMEM_HEADROOM = 2 * 1024 * 1024        # headroom for Mosaic internal scratch


# ----------------------------------------------------------------------------
# Helpers
# ----------------------------------------------------------------------------
def _round_up(v, m):
    return -(-v // m) * m


def _vmem_budget_bytes():
    """Portable scoped-VMEM allowance: <= 75% of physical, capped at 48 MiB."""
    cap = 64 * 1024 * 1024  # conservative default (v7x physical per TC)
    try:
        cap = int(getattr(pltpu.get_tpu_info(), "vmem_capacity_bytes", cap))
    except Exception:
        pass
    return int(min(cap * 3 // 4, 48 * 1024 * 1024))


def _num_parallel_cores():
    """2 for dual-TensorCore / megacore parts (v7x, v4, v5p); 1 otherwise."""
    try:
        kind = jax.devices()[0].device_kind.lower()
    except Exception:
        return 2
    return 2 if any(t in kind for t in ("v7", "7x", "v4", "v5p")) else 1


def _pick_block_rows(rows, row_align, max_block_rows, cores):
    """Row-tile size: balance bytes across cores first, then fewest grid steps."""
    max_block_rows = max(row_align, min(max_block_rows, rows))
    cands = [br for br in range(row_align, max_block_rows + 1, row_align) if br <= rows]
    if rows <= max_block_rows and rows not in cands:
        cands.append(rows)           # full-extent block (legal even if not %8)
    if not cands:
        cands = [min(row_align, rows)]
    best, best_key = None, None
    for br in cands:
        n_tiles = -(-rows // br)
        busiest = min(-(-n_tiles // max(1, cores)) * br, rows)  # rows on busiest core
        key = (busiest, n_tiles)
        if best_key is None or key < best_key:
            best, best_key = br, key
    return best


# ----------------------------------------------------------------------------
# Kernels
# ----------------------------------------------------------------------------
def _adain_kernel(x_ref, y_ref, o_ref, *, epsilon, inv_n):
    """Fused path: normalize one (block_rows, H*W) slab and apply the affine."""
    xf = x_ref[...].astype(jnp.float32)
    mean = jnp.sum(xf, axis=-1, keepdims=True) * inv_n
    mean_sq = jnp.sum(xf * xf, axis=-1, keepdims=True) * inv_n
    var = jnp.maximum(mean_sq - mean * mean, 0.0)
    inv_std = lax.rsqrt(var + epsilon)
    # (x - mean) * inv_std * y_var + y_mean  ==  x * scale + shift  (one FMA).
    scale = inv_std * y_ref[:, 1:2]
    shift = y_ref[:, 0:1] - mean * scale
    o_ref[...] = (xf * scale + shift).astype(o_ref.dtype)


def _moments_kernel(x_ref, m_ref, sum_ref, sq_ref, *, inv_n, hw, hw_tile):
    """Fallback pass 1: per-row sum / sum-of-squares over spatially tiled x."""
    k = pl.program_id(1)

    @pl.when(k == 0)
    def _():
        sum_ref[...] = jnp.zeros_like(sum_ref)
        sq_ref[...] = jnp.zeros_like(sq_ref)

    xf = x_ref[...].astype(jnp.float32)
    if hw % hw_tile != 0:
        lane = lax.broadcasted_iota(jnp.int32, xf.shape, 1)
        xf = jnp.where(k * hw_tile + lane < hw, xf, 0.0)

    sum_ref[...] += jnp.sum(xf, axis=-1, keepdims=True)
    sq_ref[...] += jnp.sum(xf * xf, axis=-1, keepdims=True)

    @pl.when(k == pl.num_programs(1) - 1)
    def _():
        m_ref[:, 0:1] = sum_ref[...] * inv_n
        m_ref[:, 1:2] = sq_ref[...] * inv_n


def _apply_kernel(m_ref, y_ref, x_ref, o_ref, *, epsilon):
    """Fallback pass 2: apply normalization + style affine on a spatial tile."""
    mean = m_ref[:, 0:1]
    var = jnp.maximum(m_ref[:, 1:2] - mean * mean, 0.0)
    inv_std = lax.rsqrt(var + epsilon)
    scale = inv_std * y_ref[:, 1:2]
    shift = y_ref[:, 0:1] - mean * scale
    o_ref[...] = (x_ref[...].astype(jnp.float32) * scale + shift).astype(o_ref.dtype)


# ----------------------------------------------------------------------------
# Wrappers
# ----------------------------------------------------------------------------
def _adain_two_pass(x2, style, epsilon, vmem_cap):
    """Spatially tiled fallback for very long rows (block would not fit VMEM)."""
    rows, hw = x2.shape
    itemsize = jnp.dtype(x2.dtype).itemsize
    block_rows = 8 if rows >= 8 else rows

    hw_tile = (_TARGET_BLOCK_BYTES // max(1, block_rows * itemsize)) // 128 * 128
    hw_tile = int(max(128, min(hw_tile, _round_up(hw, 128))))
    nr = pl.cdiv(rows, block_rows)
    nh = pl.cdiv(hw, hw_tile)

    moments = pl.pallas_call(
        functools.partial(_moments_kernel, inv_n=1.0 / hw, hw=hw, hw_tile=hw_tile),
        out_shape=jax.ShapeDtypeStruct((rows, 2), jnp.float32),
        grid=(nr, nh),
        in_specs=[pl.BlockSpec((block_rows, hw_tile), lambda i, k: (i, k))],
        out_specs=pl.BlockSpec((block_rows, 2), lambda i, k: (i, 0)),
        scratch_shapes=[pltpu.VMEM((block_rows, 1), jnp.float32),
                        pltpu.VMEM((block_rows, 1), jnp.float32)],
        compiler_params=pltpu.CompilerParams(
            dimension_semantics=("parallel", "arbitrary"),
            vmem_limit_bytes=vmem_cap),
        cost_estimate=pl.CostEstimate(
            flops=3 * rows * hw, transcendentals=0,
            bytes_accessed=rows * hw * itemsize + rows * 8),
    )(x2)

    return pl.pallas_call(
        functools.partial(_apply_kernel, epsilon=float(epsilon)),
        out_shape=jax.ShapeDtypeStruct((rows, hw), x2.dtype),
        grid=(nr, nh),
        in_specs=[pl.BlockSpec((block_rows, 2), lambda i, k: (i, 0)),
                  pl.BlockSpec((block_rows, 2), lambda i, k: (i, 0)),
                  pl.BlockSpec((block_rows, hw_tile), lambda i, k: (i, k))],
        out_specs=pl.BlockSpec((block_rows, hw_tile), lambda i, k: (i, k)),
        compiler_params=pltpu.CompilerParams(
            dimension_semantics=("parallel", "parallel"),
            vmem_limit_bytes=vmem_cap),
        cost_estimate=pl.CostEstimate(
            flops=4 * rows * hw, transcendentals=rows,
            bytes_accessed=2 * rows * hw * itemsize + rows * 16),
    )(moments, style, x2)


def adain(x, y_mean, y_var, epsilon=1e-5):
    """AdaIN forward. x: (B, C, H, W); y_mean / y_var broadcastable to (B, C, 1, 1)."""
    B, C, H, W = x.shape
    rows, hw = B * C, H * W

    x2 = x.reshape(rows, hw)
    ym = jnp.broadcast_to(jnp.asarray(y_mean), (B, C, 1, 1)).reshape(rows, 1)
    yv = jnp.broadcast_to(jnp.asarray(y_var), (B, C, 1, 1)).reshape(rows, 1)
    style = jnp.concatenate([ym, yv], axis=-1).astype(jnp.float32)  # [mean, var] per row

    itemsize = jnp.dtype(x.dtype).itemsize
    row_align = 8 if rows >= 8 else rows
    cores = _num_parallel_cores()
    vmem_cap = _vmem_budget_bytes()

    # Per-element VMEM estimate for the fused kernel: double-buffered input +
    # output (x dtype) + f32 temporaries (=> 6x block bytes for f32, 8x for bf16).
    bytes_per_elem = 4 * itemsize + 8

    if row_align * hw * bytes_per_elem + _VMEM_HEADROOM > vmem_cap:
        # Spatial extent too large for a single-block reduction.
        return _adain_two_pass(x2, style, epsilon, vmem_cap).reshape(B, C, H, W)

    by_target = (_TARGET_BLOCK_BYTES // max(1, hw * itemsize)) // row_align * row_align
    by_cap = ((vmem_cap - _VMEM_HEADROOM) // max(1, hw * bytes_per_elem)) // row_align * row_align
    max_block_rows = max(row_align, min(by_target, by_cap))
    block_rows = _pick_block_rows(rows, row_align, max_block_rows, cores)
    grid = (pl.cdiv(rows, block_rows),)

    # TODO(synk): for small non-128-aligned H*W (e.g. 7x7=49) lane utilization is
    # low; a packed layout (several (b,c) rows per 128-lane group + segmented
    # reduction) would improve it. Correctness is unaffected.
    out = pl.pallas_call(
        functools.partial(_adain_kernel, epsilon=float(epsilon), inv_n=1.0 / hw),
        out_shape=jax.ShapeDtypeStruct((rows, hw), x.dtype),
        grid=grid,
        in_specs=[pl.BlockSpec((block_rows, hw), lambda i: (i, 0)),
                  pl.BlockSpec((block_rows, 2), lambda i: (i, 0))],
        out_specs=pl.BlockSpec((block_rows, hw), lambda i: (i, 0)),
        compiler_params=pltpu.CompilerParams(
            dimension_semantics=("parallel",),
            vmem_limit_bytes=vmem_cap),
        cost_estimate=pl.CostEstimate(
            flops=7 * rows * hw, transcendentals=rows,
            bytes_accessed=2 * rows * hw * itemsize + rows * 8),
    )(x2, style)
    return out.reshape(B, C, H, W)


# ----------------------------------------------------------------------------
# Main
# ----------------------------------------------------------------------------
if __name__ == "__main__":
    key = jax.random.PRNGKey(0)
    kx, km, kv = jax.random.split(key, 3)

    def ref_adain(x, y_mean, y_var, eps=1e-5):
        b, c = x.shape[:2]
        feat = x.reshape(b, c, -1)
        xm = feat.mean(axis=2).reshape(b, c, 1, 1)
        vx = jnp.clip((feat * feat).mean(axis=2).reshape(b, c, 1, 1) - xm * xm, 0.0, None)
        return (x - xm) * lax.rsqrt(vx + eps) * y_var + y_mean

    fwd = jax.jit(adain)

    # 1) Small canonical shape (single fused-pass path).
    B, C, H, W = 2, 4, 16, 16
    x = jax.random.normal(kx, (B, C, H, W), dtype=jnp.float32)
    y_mean = jax.random.normal(km, (B, C, 1, 1), dtype=jnp.float32)
    y_var = jax.random.uniform(kv, (B, C, 1, 1), dtype=jnp.float32, minval=0.5, maxval=1.5)
    out = jax.block_until_ready(fwd(x, y_mean, y_var))
    ref = ref_adain(x, y_mean, y_var)
    assert out.shape == (B, C, H, W), out.shape
    assert bool(jnp.isfinite(out).all())
    assert bool(jnp.allclose(out, ref, atol=1e-4, rtol=1e-4)), float(jnp.max(jnp.abs(out - ref)))

    # 2) Non-multiple-of-8 rows and non-128-aligned spatial extent.
    B2, C2, H2, W2 = 3, 5, 7, 7
    x2 = jax.random.normal(kx, (B2, C2, H2, W2), dtype=jnp.float32) * 2.0 + 0.5
    ym2 = jax.random.normal(km, (B2, C2, 1, 1), dtype=jnp.float32)
    yv2 = jax.random.uniform(kv, (B2, C2, 1, 1), dtype=jnp.float32, minval=0.5, maxval=1.5)
    out2 = jax.block_until_ready(fwd(x2, ym2, yv2))
    ref2 = ref_adain(x2, ym2, yv2)
    assert bool(jnp.allclose(out2, ref2, atol=1e-4, rtol=1e-4)), float(jnp.max(jnp.abs(out2 - ref2)))

    # 3) Long spatial rows: exercises the two-pass spatially tiled fallback.
    B3, C3, H3, W3 = 1, 8, 640, 640
    x3 = jax.random.normal(kx, (B3, C3, H3, W3), dtype=jnp.float32)
    ym3 = jax.random.normal(km, (B3, C3, 1, 1), dtype=jnp.float32)
    yv3 = jax.random.uniform(kv, (B3, C3, 1, 1), dtype=jnp.float32, minval=0.5, maxval=1.5)
    out3 = jax.block_until_ready(fwd(x3, ym3, yv3))
    ref3 = ref_adain(x3, ym3, yv3)
    assert bool(jnp.isfinite(out3).all())
    assert bool(jnp.allclose(out3, ref3, atol=1e-3, rtol=1e-3)), float(jnp.max(jnp.abs(out3 - ref3)))

    print("KERNEL_OK")
</pallas_src>

<mosaic_0001>
module attributes {stable_mosaic.version = 11 : i64} {
  func.func @_adain_kernel(%arg0: i32, %arg1: memref<8x256xf32, #tpu.memory_space<vmem>>, %arg2: memref<8x2xf32, #tpu.memory_space<vmem>>, %arg3: memref<8x256xf32, #tpu.memory_space<vmem>>) attributes {dimension_semantics = [#tpu.dimension_semantics<parallel>], iteration_bounds = array<i64: 1>, scalar_prefetch = 0 : i64, scratch_operands = 0 : i64, tpu.core_type = #tpu.core_type<tc>, window_params = [{transform_indices = @transform_0, window_bounds = array<i64: 8, 256>}, {transform_indices = @transform_1, window_bounds = array<i64: 8, 2>}, {transform_indices = @transform_2, window_bounds = array<i64: 8, 256>}]} {
    %c0 = arith.constant 0 : index
    %c0_0 = arith.constant 0 : index
    %0 = vector.load %arg1[%c0, %c0_0] : memref<8x256xf32, #tpu.memory_space<vmem>>, vector<8x256xf32>
    %cst = arith.constant dense<0.000000e+00> : vector<8xf32>
    %1 = vector.multi_reduction <add>, %0, %cst [1] : vector<8x256xf32> to vector<8xf32>
    %2 = vector.shape_cast %1 : vector<8xf32> to vector<8x1xf32>
    %cst_1 = arith.constant 3.906250e-03 : f32
    %3 = vector.broadcast %cst_1 : f32 to vector<8x1xf32>
    %4 = arith.mulf %2, %3 : vector<8x1xf32>
    %5 = arith.mulf %0, %0 : vector<8x256xf32>
    %cst_2 = arith.constant dense<0.000000e+00> : vector<8xf32>
    %6 = vector.multi_reduction <add>, %5, %cst_2 [1] : vector<8x256xf32> to vector<8xf32>
    %7 = vector.shape_cast %6 : vector<8xf32> to vector<8x1xf32>
    %cst_3 = arith.constant 3.906250e-03 : f32
    %8 = vector.broadcast %cst_3 : f32 to vector<8x1xf32>
    %9 = arith.mulf %7, %8 : vector<8x1xf32>
    %10 = arith.mulf %4, %4 : vector<8x1xf32>
    %11 = arith.subf %9, %10 : vector<8x1xf32>
    %cst_4 = arith.constant 0.000000e+00 : f32
    %12 = vector.broadcast %cst_4 : f32 to vector<8x1xf32>
    %13 = arith.maximumf %11, %12 : vector<8x1xf32>
    %cst_5 = arith.constant 9.99999974E-6 : f32
    %14 = vector.broadcast %cst_5 : f32 to vector<8x1xf32>
    %15 = arith.addf %13, %14 : vector<8x1xf32>
    %16 = math.rsqrt %15 : vector<8x1xf32>
    %c0_6 = arith.constant 0 : index
    %c1 = arith.constant 1 : index
    %17 = vector.load %arg2[%c0_6, %c1] : memref<8x2xf32, #tpu.memory_space<vmem>>, vector<8x1xf32>
    %18 = arith.mulf %16, %17 : vector<8x1xf32>
    %c0_7 = arith.constant 0 : index
    %c0_8 = arith.constant 0 : index
    %19 = vector.load %arg2[%c0_7, %c0_8] : memref<8x2xf32, #tpu.memory_space<vmem>>, vector<8x1xf32>
    %20 = arith.mulf %4, %18 : vector<8x1xf32>
    %21 = arith.subf %19, %20 : vector<8x1xf32>
    %22 = vector.broadcast %18 : vector<8x1xf32> to vector<8x256xf32>
    %23 = arith.mulf %0, %22 : vector<8x256xf32>
    %24 = vector.broadcast %21 : vector<8x1xf32> to vector<8x256xf32>
    %25 = arith.addf %23, %24 : vector<8x256xf32>
    %c0_9 = arith.constant 0 : index
    %c0_10 = arith.constant 0 : index
    %26 = vector.load %arg3[%c0_9, %c0_10] : memref<8x256xf32, #tpu.memory_space<vmem>>, vector<8x256xf32>
    tpu.vector_store %arg3[%c0_9, %c0_10], %25 {strides = array<i32>} : memref<8x256xf32, #tpu.memory_space<vmem>>, vector<8x256xf32>,
    return
  }
  func.func @transform_0(%arg0: i32) -> (i32, i32) {
    %c0_i32 = arith.constant 0 : i32
    %c0_i32_0 = arith.constant 0 : i32
    return %arg0, %c0_i32 : i32, i32
  }
  func.func @transform_1(%arg0: i32) -> (i32, i32) {
    %c0_i32 = arith.constant 0 : i32
    %c0_i32_0 = arith.constant 0 : i32
    return %arg0, %c0_i32 : i32, i32
  }
  func.func @transform_2(%arg0: i32) -> (i32, i32) {
    %c0_i32 = arith.constant 0 : i32
    %c0_i32_0 = arith.constant 0 : i32
    return %arg0, %c0_i32 : i32, i32
  }
}

</mosaic_0001>

<bundles_post_ra>
// kernel: adain.1
= control target key start
LH: loop header
LB: loop body
LE: loop exit
PB: predicated region body
PF: predicated region fallthrough
CT: control target
= control target key end

     0   :  { %v73_v9 = vmov 1   ;;  %s74_s14 = smov 127   ;;  %v75_v25 = vmov 0   ;;  %s106_s0 = inlined_call_operand.vmem [shape: f32[8,256], index: 0, kind: input, shape index: {}]   ;;  %s107_s1 = inlined_call_operand.vmem [shape: f32[8,2], index: 1, kind: input, shape index: {}]   ;;  %s108_s2 = inlined_call_operand.vmem [shape: f32[8,256], index: 2, kind: output, shape index: {}]  }
   0x1   :  { %v11_v0 = vld [vmem:[%s106_s0] sm:$0xff]  ;;  %v12_v1 = vld [vmem:[%s106_s0 + $0x8] sm:$0xff]  ;;  %68 = vset.pattern.permute.xlu1 %v73_v9  ;;  %69 = vset.pattern.permute.xlu2 %v75_v25 }
   0x2   :  { %v13_v2 = vadd.f32 %v12_v1, %v11_v0  ;;  %v17_v3 = vmul.f32 %v11_v0, %v11_v0  ;;  %v18_v4 = vmul.f32 %v12_v1, %v12_v1  ;;  %v37_v21 = vld [vmem:[%s107_s1] sm:$0xff]  ;;  %70 = vset.pattern.permute.xlu0 %v75_v25 }
   0x4   :  { %14 = vadd.xlane.f32.xlu0 %v13_v2  ;;  %v19_v5 = vadd.f32 %v18_v4, %v17_v3 }
   0xc   :  { %20 = vadd.xlane.f32.xlu0 %v19_v5 }
  0x77   :  { %v15_v6 = vpop.xlane.xlu0 %14 }
  0x78   :  { %v16_v7 = vmul.f32 0.00390625, %v15_v6 }
  0x7a   :  { %v23_v10 = vmul.f32 %v16_v7, %v16_v7 }
  0x7f   :  { %v21_v8 = vpop.xlane.xlu0 %20 }
  0x80   :  { %v22_v11 = vmul.f32 0.00390625, %v21_v8 }
  0x82   :  { %v24_v12 = vsub.f32 %v22_v11, %v23_v10 }
  0x84   :  { %v25_v13 = vmax.f32 %v24_v12, 0.0 }
  0x86   :  { %v26_v14 = vadd.f32 1e-05, %v25_v13 }
  0x88   :  { %71 = vrsqrt.f32 %v26_v14  ;;  %vm33_vm1 = vweird.f32 %v26_v14 }
  0x8e   :  { %v72_v15 = vpop.eup %71 }
  0x8f   :  { %v28_v16 = vmul.f32 %v72_v15, %v26_v14  ;;  %vm34_vm0 = vweird.f32 %v72_v15 }
  0x90   :  { %vm35_vm2 = vmor %vm33_vm1, %vm34_vm0 }
  0x91   :  { %v29_v17 = vmul.f32 %v72_v15, %v28_v16 }
  0x93   :  { %v30_v18 = vmul.f32 0.5, %v29_v17 }
  0x95   :  { %v31_v19 = vsub.f32 1.5, %v30_v18 }
  0x97   :  { %v32_v20 = vmul.f32 %v72_v15, %v31_v19 }
  0x99   :  { %v36_v22 = vsel %vm35_vm2, %v72_v15, %v32_v20 }
  0x9a   :  { %v38_v23 = vmul.f32 %v37_v21, %v36_v22 }
  0x9c   :  { %v39_v24 = vmul.f32 %v38_v23, %v16_v7 }
  0x9e   :  { %41 = vrot.lane.b32.xlu1 %v39_v24, %s74_s14 }
  0xa6   :  { %47 = vperm.xlu1 %68, %v38_v23  }
 0x110   :  { %v42_v26 = vpop.permute.xlu1 %41 }
 0x111   :  { %v44_v27 = vsub.f32 %v37_v21, %v42_v26 }
 0x113   :  { %54 = vperm.xlu2 %69, %v44_v27  }
 0x118   :  { %v48_v28 = vpop.permute.xlu1 %47 }
 0x119   :  { %v50_v29 = vmul.f32 %v48_v28, %v11_v0  ;;  %v51_v30 = vmul.f32 %v48_v28, %v12_v1 }
 0x16d   :  { %v55_v31 = vpop.permute.xlu2 %54 }
 0x16e   :  { %v57_v32 = vadd.f32 %v55_v31, %v50_v29  ;;  %v58_v33 = vadd.f32 %v55_v31, %v51_v30 }
 0x170   :  { %59 = vst [vmem:[%s108_s2] sm:$0xff] %v57_v32 }
 0x171   :  { %60 = vst [vmem:[%s108_s2 + $0x8] sm:$0xff] %v58_v33 }

</bundles_post_ra>
